<compile_context>
chip_gen: v6e
topology: v6e:2x2x1
jax: 0.10.0
libtpu: 0.0.40
codegen_flags: <defaults>
</compile_context>

<pallas_src>
import jax
import jax.numpy as jnp
from jax.experimental import pallas as pl
from jax.experimental.pallas import tpu as pltpu


def _round_up(x, m):
    return ((x + m - 1) // m) * m


def _chip_defaults():
    """Returns (tm, tn, tk, vmem_limit_bytes) defaults per TPU generation."""
    kind = ""
    try:
        kind = jax.devices()[0].device_kind.lower()
    except Exception:
        pass
    if "v7" in kind:
        # v7x: 64 MiB physical VMEM per TensorCore -> keep headroom.
        return 768, 768, 1024, 48 << 20
    if "v6" in kind:
        # v6e: 918 TF/s bf16 vs ~1.4 TB/s HBM -> big output tiles, big VMEM.
        return 1024, 1024, 1024, 96 << 20
    if "v5" in kind:
        # v5e: 4x128x128 MXU, small scoped-VMEM default.
        return 512, 512, 1024, 48 << 20
    # Unknown chip: conservative defaults.
    return 512, 512, 1024, 48 << 20


def linear_kernel(x_ref, w_ref, b_ref, o_ref, acc_ref):
    # x_ref:   (tm, tk)  activation tile (mxu_dtype, typically bf16)
    # w_ref:   (tk, tn)  pre-transposed weight tile (mxu_dtype)
    # b_ref:   (1,  tn)  bias tile (f32)
    # o_ref:   (tm, tn)  output tile (f32)
    # acc_ref: (tm, tn)  f32 accumulator scratch (persists across the K axis)
    k = pl.program_id(2)

    @pl.when(k == 0)
    def _init():
        acc_ref[...] = jnp.zeros_like(acc_ref)

    # Plain (tm,tk) x (tk,tn) MXU matmul with f32 accumulation.
    acc_ref[...] += jnp.dot(
        x_ref[...], w_ref[...], preferred_element_type=jnp.float32
    )

    @pl.when(k == pl.num_programs(2) - 1)
    def _epilogue():
        o_ref[...] = (acc_ref[...] + b_ref[...]).astype(o_ref.dtype)


def my_linear_forward(x, weight, bias, *, tm=None, tn=None, tk=None,
                      mxu_dtype=jnp.bfloat16, vmem_limit_bytes=None):
    """y = x @ weight.T + bias, matching torch.nn.Linear semantics.

    x:      (B, IN)   float32
    weight: (OUT, IN) float32   (nn.Linear layout)
    bias:   (OUT,)    float32
    returns (B, OUT)  float32
    """
    B, IN = x.shape
    OUT, IN_w = weight.shape
    assert IN == IN_w, "weight last dim must match x last dim"

    d_tm, d_tn, d_tk, d_vmem = _chip_defaults()
    tm = d_tm if tm is None else tm
    tn = d_tn if tn is None else tn
    tk = d_tk if tk is None else tk
    vmem_limit_bytes = d_vmem if vmem_limit_bytes is None else vmem_limit_bytes

    # Sub-32-bit operands pack along sublanes: keep tm a multiple of 16.
    m_align = 8 if jnp.dtype(mxu_dtype).itemsize >= 4 else 16

    # Maximize tk: fold the whole reduction into one grid step when it fits
    # VMEM comfortably, otherwise use the chip default (>= 1024).
    Kp_full = _round_up(IN, 128)
    tk = Kp_full if Kp_full <= 2048 else min(tk, Kp_full)

    # Clamp tiles to the (layout-padded) problem size.
    tm = min(tm, _round_up(B, m_align))
    tn = min(tn, _round_up(OUT, 128))   # lane-dense output tile

    Mp = _round_up(B, tm)
    Np = _round_up(OUT, tn)
    Kp = _round_up(IN, tk)

    out_dtype = x.dtype

    # Cast MXU operands in the wrapper (halves DMA bytes vs f32); skip the pad
    # copy entirely when dims are already aligned.
    x_p = x.astype(mxu_dtype)
    if (Mp, Kp) != (B, IN):
        x_p = jnp.pad(x_p, ((0, Mp - B), (0, Kp - IN)))

    # One-time weight transpose to (IN, OUT): avoids any per-tile transpose in
    # the inner loop (fuses with the bf16 cast / pad in XLA).
    w_t = weight.T.astype(mxu_dtype)
    if (Kp, Np) != (IN, OUT):
        w_t = jnp.pad(w_t, ((0, Kp - IN), (0, Np - OUT)))

    b_p = bias.astype(jnp.float32)
    if Np != OUT:
        b_p = jnp.pad(b_p, (0, Np - OUT))
    b_p = b_p.reshape(1, Np)

    gm, gn, gk = Mp // tm, Np // tn, Kp // tk

    op_bytes = jnp.dtype(mxu_dtype).itemsize
    out_bytes = jnp.dtype(out_dtype).itemsize
    # x is streamed gn times, W is streamed gm times, bias every step,
    # output written once.
    bytes_accessed = (
        gm * gn * gk * (tm * tk + tk * tn) * op_bytes
        + gm * gn * gk * tn * 4
        + Mp * Np * out_bytes
    )
    cost = pl.CostEstimate(
        flops=2 * Mp * Np * Kp,
        transcendentals=0,
        bytes_accessed=int(bytes_accessed),
    )

    out_p = pl.pallas_call(
        linear_kernel,
        out_shape=jax.ShapeDtypeStruct((Mp, Np), out_dtype),
        grid_spec=pltpu.PrefetchScalarGridSpec(
            num_scalar_prefetch=0,
            grid=(gm, gn, gk),
            in_specs=[
                pl.BlockSpec((tm, tk), lambda i, j, k: (i, k)),   # x
                pl.BlockSpec((tk, tn), lambda i, j, k: (k, j)),   # W^T (IN, OUT)
                pl.BlockSpec((1, tn), lambda i, j, k: (0, j)),    # bias
            ],
            out_specs=pl.BlockSpec((tm, tn), lambda i, j, k: (i, j)),
            scratch_shapes=[pltpu.VMEM((tm, tn), jnp.float32)],
        ),
        compiler_params=pltpu.CompilerParams(
            dimension_semantics=("parallel", "parallel", "arbitrary"),
            vmem_limit_bytes=int(vmem_limit_bytes),
        ),
        cost_estimate=cost,
    )(x_p, w_t, b_p)

    return out_p[:B, :OUT]


if __name__ == "__main__":
    key = jax.random.PRNGKey(0)
    kx, kw, kb, kx2, kw2, kb2 = jax.random.split(key, 6)

    # --- Shapes implied by the reference script: x (16, 10), Linear(10 -> 5).
    batch, input_size, output_size = 16, 10, 5
    x = jax.random.normal(kx, (batch, input_size), dtype=jnp.float32)
    weight = jax.random.normal(kw, (output_size, input_size), dtype=jnp.float32) * 0.1
    bias = jax.random.normal(kb, (output_size,), dtype=jnp.float32) * 0.1

    y_ref = x @ weight.T + bias

    # Exact-f32 validation path.
    y_f32 = jax.block_until_ready(
        my_linear_forward(x, weight, bias, mxu_dtype=jnp.float32))
    assert y_f32.shape == y_ref.shape, "shape mismatch vs reference"
    assert jnp.allclose(y_f32, y_ref, atol=1e-5, rtol=1e-5), "f32 mismatch"

    # Default bf16-MXU / f32-accumulate path (relaxed tolerance).
    y_bf16 = jax.block_until_ready(my_linear_forward(x, weight, bias))
    assert jnp.allclose(y_bf16, y_ref, atol=5e-2, rtol=5e-2), "bf16 mismatch"

    # --- Medium problem exercising multi-step K accumulation + padding.
    B2, IN2, OUT2 = 64, 2304, 384
    x2 = jax.random.normal(kx2, (B2, IN2), dtype=jnp.float32)
    w2 = jax.random.normal(kw2, (OUT2, IN2), dtype=jnp.float32) * 0.02
    b2 = jax.random.normal(kb2, (OUT2,), dtype=jnp.float32) * 0.1
    y2_ref = x2 @ w2.T + b2

    y2 = jax.block_until_ready(my_linear_forward(x2, w2, b2))
    assert y2.shape == y2_ref.shape, "shape mismatch vs reference (medium)"
    assert jnp.allclose(y2, y2_ref, atol=5e-2, rtol=5e-2), "bf16 mismatch (medium)"

    print("KERNEL_OK")
</pallas_src>

<mosaic_0001>
module attributes {stable_mosaic.version = 11 : i64} {
  func.func @linear_kernel(%arg0: i32, %arg1: i32, %arg2: i32, %arg3: memref<16x128xf32, #tpu.memory_space<vmem>>, %arg4: memref<128x128xf32, #tpu.memory_space<vmem>>, %arg5: memref<1x128xf32, #tpu.memory_space<vmem>>, %arg6: memref<16x128xf32, #tpu.memory_space<vmem>>, %arg7: memref<16x128xf32, #tpu.memory_space<vmem>>) attributes {dimension_semantics = [#tpu.dimension_semantics<parallel>, #tpu.dimension_semantics<parallel>, #tpu.dimension_semantics<arbitrary>], iteration_bounds = array<i64: 1, 1, 1>, scalar_prefetch = 0 : i64, scratch_operands = 1 : i64, tpu.core_type = #tpu.core_type<tc>, window_params = [{transform_indices = @transform_0, window_bounds = array<i64: 16, 128>}, {transform_indices = @transform_1, window_bounds = array<i64: 128, 128>}, {transform_indices = @transform_2, window_bounds = array<i64: 1, 128>}, {transform_indices = @transform_3, window_bounds = array<i64: 16, 128>}]} {
    %c0_i32 = arith.constant 0 : i32
    %0 = arith.cmpi eq, %arg2, %c0_i32 : i32
    %1 = arith.extui %0 : i1 to i32
    %c0_i32_0 = arith.constant 0 : i32
    %2 = arith.cmpi ne, %1, %c0_i32_0 : i32
    scf.if %2 {
      %cst_10 = arith.constant 0.000000e+00 : f32
      %12 = vector.broadcast %cst_10 : f32 to vector<16x128xf32>
      %c0_11 = arith.constant 0 : index
      %c0_12 = arith.constant 0 : index
      %13 = vector.load %arg7[%c0_11, %c0_12] : memref<16x128xf32, #tpu.memory_space<vmem>>, vector<16x128xf32>
      tpu.vector_store %arg7[%c0_11, %c0_12], %12 {strides = array<i32>} : memref<16x128xf32, #tpu.memory_space<vmem>>, vector<16x128xf32>,
    } else {
    }
    %c0 = arith.constant 0 : index
    %c0_1 = arith.constant 0 : index
    %3 = vector.load %arg7[%c0, %c0_1] : memref<16x128xf32, #tpu.memory_space<vmem>>, vector<16x128xf32>
    %c0_2 = arith.constant 0 : index
    %c0_3 = arith.constant 0 : index
    %4 = vector.load %arg3[%c0_2, %c0_3] : memref<16x128xf32, #tpu.memory_space<vmem>>, vector<16x128xf32>
    %c0_4 = arith.constant 0 : index
    %c0_5 = arith.constant 0 : index
    %5 = vector.load %arg4[%c0_4, %c0_5] : memref<128x128xf32, #tpu.memory_space<vmem>>, vector<128x128xf32>
    %cst = arith.constant dense<0.000000e+00> : vector<16x128xf32>
    %6 = tpu.matmul %4, %5, %cst {dimension_numbers = #tpu.dot_dimension_numbers<[1], [0], [0], [1], [0, 0, 1, 1], [], []>} : vector<16x128xf32>, vector<128x128xf32>, vector<16x128xf32> -> vector<16x128xf32>
    %7 = arith.addf %3, %6 : vector<16x128xf32>
    %c0_6 = arith.constant 0 : index
    %c0_7 = arith.constant 0 : index
    %8 = vector.load %arg7[%c0_6, %c0_7] : memref<16x128xf32, #tpu.memory_space<vmem>>, vector<16x128xf32>
    tpu.vector_store %arg7[%c0_6, %c0_7], %7 {strides = array<i32>} : memref<16x128xf32, #tpu.memory_space<vmem>>, vector<16x128xf32>,
    %c0_i32_8 = arith.constant 0 : i32
    %9 = arith.cmpi eq, %arg2, %c0_i32_8 : i32
    %10 = arith.extui %9 : i1 to i32
    %c0_i32_9 = arith.constant 0 : i32
    %11 = arith.cmpi ne, %10, %c0_i32_9 : i32
    scf.if %11 {
      %c0_10 = arith.constant 0 : index
      %c0_11 = arith.constant 0 : index
      %12 = vector.load %arg7[%c0_10, %c0_11] : memref<16x128xf32, #tpu.memory_space<vmem>>, vector<16x128xf32>
      %c0_12 = arith.constant 0 : index
      %c0_13 = arith.constant 0 : index
      %13 = vector.load %arg5[%c0_12, %c0_13] : memref<1x128xf32, #tpu.memory_space<vmem>>, vector<1x128xf32>
      %14 = vector.broadcast %13 : vector<1x128xf32> to vector<16x128xf32>
      %15 = arith.addf %12, %14 : vector<16x128xf32>
      %c0_14 = arith.constant 0 : index
      %c0_15 = arith.constant 0 : index
      %16 = vector.load %arg6[%c0_14, %c0_15] : memref<16x128xf32, #tpu.memory_space<vmem>>, vector<16x128xf32>
      tpu.vector_store %arg6[%c0_14, %c0_15], %15 {strides = array<i32>} : memref<16x128xf32, #tpu.memory_space<vmem>>, vector<16x128xf32>,
    } else {
    }
    return
  }
  func.func @transform_0(%arg0: i32, %arg1: i32, %arg2: i32) -> (i32, i32) {
    %c0_i32 = arith.constant 0 : i32
    return %arg0, %arg2 : i32, i32
  }
  func.func @transform_1(%arg0: i32, %arg1: i32, %arg2: i32) -> (i32, i32) {
    %c0_i32 = arith.constant 0 : i32
    return %arg2, %arg1 : i32, i32
  }
  func.func @transform_2(%arg0: i32, %arg1: i32, %arg2: i32) -> (i32, i32) {
    %c0_i32 = arith.constant 0 : i32
    %c0_i32_0 = arith.constant 0 : i32
    return %c0_i32, %arg1 : i32, i32
  }
  func.func @transform_3(%arg0: i32, %arg1: i32, %arg2: i32) -> (i32, i32) {
    %c0_i32 = arith.constant 0 : i32
    return %arg0, %arg1 : i32, i32
  }
}

</mosaic_0001>

<bundles_post_ra>
// kernel: tpu_custom_call.1
= control target key start
LH: loop header
LB: loop body
LE: loop exit
PB: predicated region body
PF: predicated region fallthrough
CT: control target
= control target key end

     0   :  { %8 = vsyncpa [#allocation4], 0  ;;  %s353_s0 = inlined_call_operand.hbm [shape: f32[16,128], index: 0, kind: input, shape index: {}]   ;;  %s354_s1 = inlined_call_operand.hbm [shape: f32[128,128], index: 1, kind: input, shape index: {}]   ;;  %s355_s2 = inlined_call_operand.vmem [shape: f32[1,128], index: 2, kind: input, shape index: {}]   ;;  %s356_s3 = inlined_call_operand.hbm [shape: f32[16,128], index: 3, kind: output, shape index: {}]  }
   0x1   :  { %9 = vsyncpa [#allocation7], 0 }
   0x2   :  { %10 = vsyncpa [#allocation5], 0  ;;  %s307_s12 = smov [#allocation3]  }
   0x3   :  { %s16_s13 = sshll.u32 %s307_s12, 4  ;;  %s17_s13 = int_to_ptr.vmem [resolvable:$true] %s16_s13 }
   0x4   :  { %s249_s14 = scalar_lea.vmem %s17_s13, 256  ;;  %p254_p1 = scmp.lt.s32.totalorder %s17_s13, %s17_s13 }
   0x5   :  { %p250_p0 = scmp.ne.s32.totalorder %s17_s13, %s249_s14  ;;  %p255_p2 = scmp.lt.s32.totalorder %s249_s14, %s249_s14 }
   0x7   :  { %p256_p3 = por %p255_p2, %p254_p1 }
   0x9   :  { %p257_p4 = pnand %p256_p3, %p250_p0 }
   0xb   :  { %260 = shalt.err (!%p257_p4)
}
   0xc   :  { %s308_s15 = smov 128   ;;  %s309_s16 = smov 8  }
   0xd   :  { %22 = dma.hbm_to_vmem [thread:$0]  %s353_s0, 256, %s17_s13, [#allocation4], %s308_s15, %s308_s15, %s309_s16  }
   0xe   :  { %s310_s19 = smov [#allocation6]  }
   0xf   :  { %s28_s20 = sshll.u32 %s310_s19, 4  ;;  %s29_s20 = int_to_ptr.vmem [resolvable:$true] %s28_s20 }
  0x10   :  { %s269_s21 = scalar_lea.vmem %s29_s20, 2048  ;;  %p274_p6 = scmp.lt.s32.totalorder %s29_s20, %s29_s20 }
  0x11   :  { %p270_p5 = scmp.ne.s32.totalorder %s29_s20, %s269_s21  ;;  %p275_p7 = scmp.lt.s32.totalorder %s269_s21, %s269_s21 }
  0x13   :  { %p276_p8 = por %p275_p7, %p274_p6 }
  0x15   :  { %p277_p9 = pnand %p276_p8, %p270_p5 }
  0x17   :  { %280 = shalt.err (!%p277_p9)
}
  0x18   :  { %34 = dma.hbm_to_vmem [thread:$0]  %s354_s1, 2048, %s29_s20, [#allocation7], %s308_s15, %s308_s15, %s309_s16  }
  0x19   :  { %301 = dma.done.wait [#allocation4], 256  }
  0x1a   :  { %302 = vsyncadd [#allocation4], 4294967040 }
  0x1b   :  { %303 = dma.done.wait [#allocation7], 2048  }
  0x1c   :  { %304 = vsyncadd [#allocation7], 4294965248  ;;  %v68_v0 = vld [vmem:[#allocation6 + $0x78] sm:$0xff]  ;;  %v67_v1 = vld [vmem:[#allocation6 + $0x70] sm:$0xff]  ;;  %s311_s24 = smov [#allocation8]  }
  0x1d   :  { %201 = vmatprep.subr.mxu0 %v68_v0  ;;  %v66_v2 = vld [vmem:[#allocation6 + $0x68] sm:$0xff]  ;;  %v65_v3 = vld [vmem:[#allocation6 + $0x60] sm:$0xff]  ;;  %v51_v4 = vld [vmem:[#allocation3] sm:$0xff]  ;;  %s169_s25 = sshll.u32 %s311_s24, 4  ;;  %s170_s25 = int_to_ptr.vmem [resolvable:$true] %s169_s25 }
  0x1e   :  { %202 = vmatpush3.msra.mxu0 %v68_v0  ;;  %v64_v5 = vld [vmem:[#allocation6 + $0x58] sm:$0xff]  ;;  %233 = vmatprep.mubr.f32.mxu0 %v51_v4  ;;  %v63_v6 = vld [vmem:[#allocation6 + $0x50] sm:$0xff]  ;;  %v62_v7 = vld [vmem:[#allocation6 + $0x48] sm:$0xff]  ;;  %s281_s26 = scalar_lea.vmem %s170_s25, 256  ;;  %p286_p11 = scmp.lt.s32.totalorder %s170_s25, %s170_s25 }
  0x1f   :  { %203 = vmatprep.subr.mxu0 %v67_v1  ;;  %v61_v8 = vld [vmem:[#allocation6 + $0x40] sm:$0xff]  ;;  %v60_v9 = vld [vmem:[#allocation6 + $0x38] sm:$0xff]  ;;  %v59_v10 = vld [vmem:[#allocation6 + $0x30] sm:$0xff]  ;;  %p282_p10 = scmp.ne.s32.totalorder %s170_s25, %s281_s26  ;;  %p287_p12 = scmp.lt.s32.totalorder %s281_s26, %s281_s26 }
  0x20   :  { %204 = vmatpush3.msra.mxu0 %v67_v1  ;;  %v58_v11 = vld [vmem:[#allocation6 + $0x28] sm:$0xff]  ;;  %v57_v12 = vld [vmem:[#allocation6 + $0x20] sm:$0xff]  ;;  %v56_v13 = vld [vmem:[#allocation6 + $0x18] sm:$0xff] }
  0x21   :  { %205 = vmatprep.subr.mxu0 %v66_v2  ;;  %v55_v14 = vld [vmem:[#allocation6 + $0x10] sm:$0xff]  ;;  %v54_v15 = vld [vmem:[#allocation6 + $0x8] sm:$0xff]  ;;  %v53_v16 = vld [vmem:[#allocation6] sm:$0xff]  ;;  %p288_p13 = por %p287_p12, %p286_p11 }
  0x22   :  { %206 = vmatpush3.msra.mxu0 %v66_v2  ;;  %v52_v17 = vld [vmem:[#allocation3 + $0x8] sm:$0xff]  ;;  %v182_v18 = vld [vmem:[%s355_s2] ss:$0 sm:$0xff] }
  0x23   :  { %207 = vmatprep.subr.mxu0 %v65_v3  ;;  %p289_p0 = pnand %p288_p13, %p282_p10 }
  0x24   :  { %208 = vmatpush3.msra.mxu0 %v65_v3 }
  0x25   :  { %209 = vmatprep.subr.mxu0 %v64_v5 }
  0x26   :  { %210 = vmatpush3.msra.mxu0 %v64_v5 }
  0x27   :  { %211 = vmatprep.subr.mxu0 %v63_v6 }
  0x28   :  { %212 = vmatpush3.msra.mxu0 %v63_v6 }
  0x29   :  { %213 = vmatprep.subr.mxu0 %v62_v7 }
  0x2a   :  { %214 = vmatpush3.msra.mxu0 %v62_v7 }
  0x2b   :  { %215 = vmatprep.subr.mxu0 %v61_v8 }
  0x2c   :  { %216 = vmatpush3.msra.mxu0 %v61_v8 }
  0x2d   :  { %217 = vmatprep.subr.mxu0 %v60_v9 }
  0x2e   :  { %218 = vmatpush3.msra.mxu0 %v60_v9 }
  0x2f   :  { %219 = vmatprep.subr.mxu0 %v59_v10 }
  0x30   :  { %220 = vmatpush3.msra.mxu0 %v59_v10 }
  0x31   :  { %221 = vmatprep.subr.mxu0 %v58_v11 }
  0x32   :  { %222 = vmatpush3.msra.mxu0 %v58_v11 }
  0x33   :  { %223 = vmatprep.subr.mxu0 %v57_v12 }
  0x34   :  { %224 = vmatpush3.msra.mxu0 %v57_v12 }
  0x35   :  { %225 = vmatprep.subr.mxu0 %v56_v13 }
  0x36   :  { %226 = vmatpush3.msra.mxu0 %v56_v13 }
  0x37   :  { %227 = vmatprep.subr.mxu0 %v55_v14 }
  0x38   :  { %228 = vmatpush3.msra.mxu0 %v55_v14 }
  0x39   :  { %229 = vmatprep.subr.mxu0 %v54_v15 }
  0x3a   :  { %230 = vmatpush3.msra.mxu0 %v54_v15 }
  0x3b   :  { %231 = vmatprep.subr.mxu0 %v53_v16 }
  0x3c   :  { %232 = vmatpush3.msra.mxu0 %v53_v16 }
  0x3d   :  { %234 = vmatmul.mubr.f32.vlgmr.msra.gmra.mxu0 %v52_v17 }
  0xfd   :  { %v235_v19 = vpop.f32.mrf.mxu0 }
  0xfe   :  { %v161_v20 = vadd.f32 %v235_v19, %v182_v18 }
  0xff   :  { %v135_v21 = vpop.f32.mrf.mxu0 }
 0x100   :  { %163 = vst [vmem:[#allocation8 + $0x8] sm:$0xff] %v161_v20  ;;  %v160_v22 = vadd.f32 %v182_v18, %v135_v21 }
 0x102   :  { %162 = vst [vmem:[#allocation8] sm:$0xff] %v160_v22 }
 0x103   :  { %292 = shalt.err (!%p289_p0)
}
 0x104   :  { %175 = dma.vmem_to_hbm [thread:$0]  %s170_s25, 256, %s356_s3, [#allocation5], %s308_s15, %s308_s15, %s309_s16  }
 0x105   :  { %305 = dma.done.wait [#allocation5], 256  }
 0x106   :  { %306 = vsyncadd [#allocation5], 4294967040 }
 0x107   :  { %179 = vsyncpa [#allocation4], 1 }
 0x108   :  { %180 = vsyncpa [#allocation7], 1 }
 0x109   :  { %181 = vsyncpa [#allocation5], 1 }

</bundles_post_ra>
